<compile_context>
chip_gen: v5e
topology: v5e:2x2
jax: 0.10.0
libtpu: 0.0.40
codegen_flags: <defaults>
</compile_context>

<pallas_src>
import jax
import jax.numpy as jnp
from jax.experimental import pallas as pl
from jax.experimental.pallas import tpu as pltpu


def _residual_ff_kernel(x_ref, w1_ref, b1_ref, w2_ref, b2_ref, o_ref):
    """out = GELU(x @ W1 + b1) @ W2 + b2 + x  for one row tile.

    Matmul operands stay in their native dtype (bf16 feeds the MXU directly,
    with f32 accumulation); bias / GELU / residual math is done in f32.
    """
    x = x_ref[...]                                   # (TM, D), native dtype

    # First projection (MXU, f32 accumulate) + bias + GELU (VPU/EUP, f32).
    h = jnp.dot(x, w1_ref[...], preferred_element_type=jnp.float32)
    h = h + b1_ref[...].astype(jnp.float32)          # b1 is (1, H) -> broadcast
    h = jax.nn.gelu(h)                               # tanh-approx (default)

    # Second projection (MXU) + bias; activations cast back to weight dtype
    # so a bf16 model keeps full MXU throughput.
    y = jnp.dot(h.astype(w2_ref.dtype), w2_ref[...],
                preferred_element_type=jnp.float32)
    y = y + b2_ref[...].astype(jnp.float32)          # b2 is (1, D) -> broadcast

    # Fused residual add in f32, single cast to the output dtype.
    o_ref[...] = (y + x.astype(jnp.float32)).astype(o_ref.dtype)


def _choose_row_tile(n_rows, dtype):
    """Row-tile size: large enough to amortize per-step overhead (~512 rows
    f32 / ~1024 rows bf16), sublane-aligned, clamped to the problem size."""
    target = 1024 if dtype == jnp.bfloat16 else 512
    if n_rows <= target:
        return n_rows            # single block == full array -> always legal
    return target                # multiple of 8; Pallas pads the tail tile


def _vmem_limit_bytes(tm, d, h, dtype):
    """Raise the scoped-VMEM ceiling above the 16/32 MiB defaults, capped at
    56 MiB so it still leaves ~8 MiB headroom on v7x (64 MiB physical)."""
    isz = jnp.dtype(dtype).itemsize
    weights = (d * h + h * d) * isz + (h + d) * 4
    io_tiles = 2 * 2 * tm * d * isz                  # x + out, double-buffered
    interm = tm * h * 4 + tm * d * 4                 # f32 h / y intermediates
    need = weights + io_tiles + interm
    return int(min(max(2 * need, 32 * 1024 * 1024), 56 * 1024 * 1024))


def residual_add_ff(x, w1, b1, w2, b2):
    """ResidualAdd(feed-forward): out = GELU(x @ W1 + b1) @ W2 + b2 + x.

    x: [B, S, D]; w1: [D, H]; b1: [H]; w2: [H, D]; b2: [D].
    """
    B, S, D = x.shape
    H = w1.shape[1]
    n_rows = B * S

    x2d = x.reshape(n_rows, D)
    b1_2d = b1.reshape(1, H)
    b2_2d = b2.reshape(1, D)

    tm = _choose_row_tile(n_rows, x.dtype)
    grid = (pl.cdiv(n_rows, tm),)

    itemsize = jnp.dtype(x.dtype).itemsize
    cost = pl.CostEstimate(
        flops=4 * n_rows * D * H,                              # two matmuls
        transcendentals=n_rows * H,                            # GELU
        bytes_accessed=(2 * n_rows * D + 2 * D * H) * itemsize + (H + D) * 4,
    )

    out2d = pl.pallas_call(
        _residual_ff_kernel,
        out_shape=jax.ShapeDtypeStruct((n_rows, D), x.dtype),
        grid_spec=pltpu.PrefetchScalarGridSpec(
            num_scalar_prefetch=0,
            grid=grid,
            in_specs=[
                # x: streamed / double-buffered per row tile.
                pl.BlockSpec((tm, D), lambda i: (i, 0)),
                # weights + biases: VMEM-resident across all row tiles.
                pl.BlockSpec((D, H), lambda i: (0, 0)),
                pl.BlockSpec((1, H), lambda i: (0, 0)),
                pl.BlockSpec((H, D), lambda i: (0, 0)),
                pl.BlockSpec((1, D), lambda i: (0, 0)),
            ],
            out_specs=pl.BlockSpec((tm, D), lambda i: (i, 0)),
        ),
        compiler_params=pltpu.CompilerParams(
            # Row tiles are independent -> allow megacore / multi-TC sharding.
            dimension_semantics=("parallel",),
            vmem_limit_bytes=_vmem_limit_bytes(tm, D, H, x.dtype),
        ),
        cost_estimate=cost,
    )(x2d, w1, b1_2d, w2, b2_2d)

    return out2d.reshape(B, S, D)


def _reference(x, w1, b1, w2, b2):
    """Pure-JAX reference matching the kernel's precision path."""
    B, S, D = x.shape
    x2d = x.reshape(B * S, D)
    h = jnp.dot(x2d, w1, preferred_element_type=jnp.float32)
    h = jax.nn.gelu(h + b1.astype(jnp.float32))
    y = jnp.dot(h.astype(w2.dtype), w2, preferred_element_type=jnp.float32)
    y = y + b2.astype(jnp.float32)
    out = (y + x2d.astype(jnp.float32)).astype(x.dtype)
    return out.reshape(B, S, D)


if __name__ == "__main__":
    key = jax.random.PRNGKey(0)

    def make_inputs(k, B, S, D, H, dtype):
        k_x, k_w1, k_b1, k_w2, k_b2 = jax.random.split(k, 5)
        x = jax.random.normal(k_x, (B, S, D), dtype=jnp.float32).astype(dtype)
        w1 = (jax.random.normal(k_w1, (D, H), jnp.float32) / jnp.sqrt(D)).astype(dtype)
        b1 = (jax.random.normal(k_b1, (H,), jnp.float32) * 0.01).astype(dtype)
        w2 = (jax.random.normal(k_w2, (H, D), jnp.float32) / jnp.sqrt(H)).astype(dtype)
        b2 = (jax.random.normal(k_b2, (D,), jnp.float32) * 0.01).astype(dtype)
        return x, w1, b1, w2, b2

    k1, k2 = jax.random.split(key)

    # 1) Small f32 instance (module-scale shapes: batch=2, seq=8, hidden=32).
    x, w1, b1, w2, b2 = make_inputs(k1, 2, 8, 32, 64, jnp.float32)
    out = jax.block_until_ready(residual_add_ff(x, w1, b1, w2, b2))
    ref = _reference(x, w1, b1, w2, b2)
    assert out.shape == x.shape and out.dtype == x.dtype
    assert jnp.allclose(out, ref, atol=1e-4, rtol=1e-4), "f32 mismatch vs reference"

    # 2) Larger bf16 instance: exercises the row-tiled / pipelined path
    #    (2048 rows -> 2 row tiles), native-bf16 MXU operands, lane-dense dims.
    xb, w1b, b1b, w2b, b2b = make_inputs(k2, 4, 512, 128, 256, jnp.bfloat16)
    outb = jax.block_until_ready(residual_add_ff(xb, w1b, b1b, w2b, b2b))
    refb = _reference(xb, w1b, b1b, w2b, b2b)
    assert outb.shape == xb.shape and outb.dtype == xb.dtype
    assert jnp.allclose(outb.astype(jnp.float32), refb.astype(jnp.float32),
                        atol=3e-2, rtol=3e-2), "bf16 mismatch vs reference"

    print("KERNEL_OK")
</pallas_src>

<mosaic_0001>
module attributes {stable_mosaic.version = 11 : i64} {
  func.func @_residual_ff_kernel(%arg0: i32, %arg1: memref<16x32xf32, #tpu.memory_space<vmem>>, %arg2: memref<32x64xf32, #tpu.memory_space<vmem>>, %arg3: memref<1x64xf32, #tpu.memory_space<vmem>>, %arg4: memref<64x32xf32, #tpu.memory_space<vmem>>, %arg5: memref<1x32xf32, #tpu.memory_space<vmem>>, %arg6: memref<16x32xf32, #tpu.memory_space<vmem>>) attributes {dimension_semantics = [#tpu.dimension_semantics<parallel>], iteration_bounds = array<i64: 1>, scalar_prefetch = 0 : i64, scratch_operands = 0 : i64, tpu.core_type = #tpu.core_type<tc>, window_params = [{transform_indices = @transform_0, window_bounds = array<i64: 16, 32>}, {pipeline_mode = #tpu.pipeline_mode<synchronous>, transform_indices = @transform_1, window_bounds = array<i64: 32, 64>}, {pipeline_mode = #tpu.pipeline_mode<synchronous>, transform_indices = @transform_2, window_bounds = array<i64: 1, 64>}, {pipeline_mode = #tpu.pipeline_mode<synchronous>, transform_indices = @transform_3, window_bounds = array<i64: 64, 32>}, {pipeline_mode = #tpu.pipeline_mode<synchronous>, transform_indices = @transform_4, window_bounds = array<i64: 1, 32>}, {transform_indices = @transform_5, window_bounds = array<i64: 16, 32>}]} {
    %c0 = arith.constant 0 : index
    %c0_0 = arith.constant 0 : index
    %0 = vector.load %arg1[%c0, %c0_0] : memref<16x32xf32, #tpu.memory_space<vmem>>, vector<16x32xf32>
    %c0_1 = arith.constant 0 : index
    %c0_2 = arith.constant 0 : index
    %1 = vector.load %arg2[%c0_1, %c0_2] : memref<32x64xf32, #tpu.memory_space<vmem>>, vector<32x64xf32>
    %cst = arith.constant dense<0.000000e+00> : vector<16x64xf32>
    %2 = tpu.matmul %0, %1, %cst {dimension_numbers = #tpu.dot_dimension_numbers<[1], [0], [0], [1], [0, 0, 1, 1], [], []>} : vector<16x32xf32>, vector<32x64xf32>, vector<16x64xf32> -> vector<16x64xf32>
    %c0_3 = arith.constant 0 : index
    %c0_4 = arith.constant 0 : index
    %3 = vector.load %arg3[%c0_3, %c0_4] : memref<1x64xf32, #tpu.memory_space<vmem>>, vector<1x64xf32>
    %4 = vector.broadcast %3 : vector<1x64xf32> to vector<16x64xf32>
    %5 = arith.addf %2, %4 : vector<16x64xf32>
    %6 = arith.mulf %5, %5 : vector<16x64xf32>
    %7 = arith.mulf %5, %6 : vector<16x64xf32>
    %cst_5 = arith.constant 4.471500e-02 : f32
    %8 = vector.broadcast %cst_5 : f32 to vector<16x64xf32>
    %9 = arith.mulf %8, %7 : vector<16x64xf32>
    %10 = arith.addf %5, %9 : vector<16x64xf32>
    %cst_6 = arith.constant 0.797884583 : f32
    %11 = vector.broadcast %cst_6 : f32 to vector<16x64xf32>
    %12 = arith.mulf %11, %10 : vector<16x64xf32>
    %13 = math.tanh %12 : vector<16x64xf32>
    %cst_7 = arith.constant 1.000000e+00 : f32
    %14 = vector.broadcast %cst_7 : f32 to vector<16x64xf32>
    %15 = arith.addf %14, %13 : vector<16x64xf32>
    %cst_8 = arith.constant 5.000000e-01 : f32
    %16 = vector.broadcast %cst_8 : f32 to vector<16x64xf32>
    %17 = arith.mulf %16, %15 : vector<16x64xf32>
    %18 = arith.mulf %5, %17 : vector<16x64xf32>
    %c0_9 = arith.constant 0 : index
    %c0_10 = arith.constant 0 : index
    %19 = vector.load %arg4[%c0_9, %c0_10] : memref<64x32xf32, #tpu.memory_space<vmem>>, vector<64x32xf32>
    %cst_11 = arith.constant dense<0.000000e+00> : vector<16x32xf32>
    %20 = tpu.matmul %18, %19, %cst_11 {dimension_numbers = #tpu.dot_dimension_numbers<[1], [0], [0], [1], [0, 0, 1, 1], [], []>} : vector<16x64xf32>, vector<64x32xf32>, vector<16x32xf32> -> vector<16x32xf32>
    %c0_12 = arith.constant 0 : index
    %c0_13 = arith.constant 0 : index
    %21 = vector.load %arg5[%c0_12, %c0_13] : memref<1x32xf32, #tpu.memory_space<vmem>>, vector<1x32xf32>
    %22 = vector.broadcast %21 : vector<1x32xf32> to vector<16x32xf32>
    %23 = arith.addf %20, %22 : vector<16x32xf32>
    %24 = arith.addf %23, %0 : vector<16x32xf32>
    %c0_14 = arith.constant 0 : index
    %c0_15 = arith.constant 0 : index
    %25 = vector.load %arg6[%c0_14, %c0_15] : memref<16x32xf32, #tpu.memory_space<vmem>>, vector<16x32xf32>
    tpu.vector_store %arg6[%c0_14, %c0_15], %24 {strides = array<i32>} : memref<16x32xf32, #tpu.memory_space<vmem>>, vector<16x32xf32>,
    return
  }
  func.func @transform_0(%arg0: i32) -> (i32, i32) {
    %c0_i32 = arith.constant 0 : i32
    %c0_i32_0 = arith.constant 0 : i32
    return %arg0, %c0_i32 : i32, i32
  }
  func.func @transform_1(%arg0: i32) -> (i32, i32) {
    %c0_i32 = arith.constant 0 : i32
    %c0_i32_0 = arith.constant 0 : i32
    %c0_i32_1 = arith.constant 0 : i32
    return %c0_i32, %c0_i32_0 : i32, i32
  }
  func.func @transform_2(%arg0: i32) -> (i32, i32) {
    %c0_i32 = arith.constant 0 : i32
    %c0_i32_0 = arith.constant 0 : i32
    %c0_i32_1 = arith.constant 0 : i32
    return %c0_i32, %c0_i32_0 : i32, i32
  }
  func.func @transform_3(%arg0: i32) -> (i32, i32) {
    %c0_i32 = arith.constant 0 : i32
    %c0_i32_0 = arith.constant 0 : i32
    %c0_i32_1 = arith.constant 0 : i32
    return %c0_i32, %c0_i32_0 : i32, i32
  }
  func.func @transform_4(%arg0: i32) -> (i32, i32) {
    %c0_i32 = arith.constant 0 : i32
    %c0_i32_0 = arith.constant 0 : i32
    %c0_i32_1 = arith.constant 0 : i32
    return %c0_i32, %c0_i32_0 : i32, i32
  }
  func.func @transform_5(%arg0: i32) -> (i32, i32) {
    %c0_i32 = arith.constant 0 : i32
    %c0_i32_0 = arith.constant 0 : i32
    return %arg0, %c0_i32 : i32, i32
  }
}

</mosaic_0001>

<bundles_post_ra>
// kernel: tpu_custom_call.1
= control target key start
LH: loop header
LB: loop body
LE: loop exit
PB: predicated region body
PF: predicated region fallthrough
CT: control target
= control target key end

     0   :  { %s286_s0 = inlined_call_operand.vmem [shape: f32[16,32], index: 0, kind: input, shape index: {}]   ;;  %s287_s1 = inlined_call_operand.vmem [shape: f32[32,64], index: 1, kind: input, shape index: {}]   ;;  %s288_s2 = inlined_call_operand.vmem [shape: f32[1,64], index: 2, kind: input, shape index: {}]   ;;  %s289_s3 = inlined_call_operand.vmem [shape: f32[64,32], index: 3, kind: input, shape index: {}]   ;;  %s290_s4 = inlined_call_operand.vmem [shape: f32[1,32], index: 4, kind: input, shape index: {}]   ;;  %s291_s5 = inlined_call_operand.hbm [shape: f32[16,32], index: 5, kind: output, shape index: {}]  }
   0x1   :  { %v26_v0 = vld [vmem:[%s287_s1 + $0x18] sm:$0xff]  ;;  %v25_v1 = vld [vmem:[%s287_s1 + $0x10] sm:$0xff]  ;;  %v24_v2 = vld [vmem:[%s287_s1 + $0x8] sm:$0xff] }
   0x2   :  { %50 = vmatpush.msra.mxu0 %v26_v0  ;;  %147 = vmatpush.msra.mxu3 %v26_v0 }
   0x4   :  { %51 = vmatpush.msra.mxu0 %v25_v1  ;;  %148 = vmatpush.msra.mxu3 %v25_v1 }
   0x5   :  { %10 = vsyncpa [#allocation3], 0  ;;  %v23_v3 = vld [vmem:[%s287_s1] sm:$0xff]  ;;  %vm31_vm0 = vcmask 261120   ;;  %v245_v5 = vld [vmem:[%s286_s0 + $0x8] sm:$0xff]  ;;  %vm91_vm1 = vcmask 523264  }
   0x6   :  { %52 = vmatpush.msra.mxu0 %v24_v2  ;;  %149 = vmatpush.msra.mxu3 %v24_v2  ;;  %v21_v4 = vld [vmem:[%s286_s0] sm:$0xff]  ;;  %v86_v6 = vld [vmem:[%s289_s3 + $0x38] sm:$0xff]  ;;  %v85_v7 = vld [vmem:[%s289_s3 + $0x30] sm:$0xff]  ;;  %s194_s21 = smov [#allocation2]   ;;  %s131_s25 = sshll.u32 %s291_s5, 4  ;;  %s132_s25 = int_to_ptr.hbm [resolvable:$true] %s131_s25 }
   0x7   :  { %106 = vmatpush.msra.mxu1 %v86_v6  ;;  %151 = vmatpush.msra.mxu2 %v86_v6  ;;  %v84_v8 = vld [vmem:[%s289_s3 + $0x28] sm:$0xff]  ;;  %v83_v9 = vld [vmem:[%s289_s3 + $0x20] sm:$0xff]  ;;  %v82_v10 = vld [vmem:[%s289_s3 + $0x18] sm:$0xff]  ;;  %s129_s22 = sshll.u32 %s194_s21, 4  ;;  %s196_s26 = smov 8   ;;  %s130_s22 = int_to_ptr.vmem [resolvable:$true] %s129_s22 }
   0x8   :  { %53 = vmatpush.msra.mxu0 %v23_v3  ;;  %150 = vmatpush.msra.mxu3 %v23_v3  ;;  %v81_v11 = vld [vmem:[%s289_s3 + $0x10] sm:$0xff]  ;;  %v80_v12 = vld [vmem:[%s289_s3 + $0x8] sm:$0xff]  ;;  %v79_v13 = vld [vmem:[%s289_s3] sm:$0xff] }
   0x9   :  { %143 = vmatmul.msk.f32.vlgmr.msra.gmra.mxu0 %vm31_vm0, %v21_v4  ;;  %144 = vmatmul.msk.f32.vlgmr.msra.gmra.mxu3 %vm31_vm0, %v245_v5  ;;  %v162_v14 = vld [vmem:[%s288_s2] ss:$0 sm:$0xff] }
   0xa   :  { %107 = vmatpush.msra.mxu1 %v85_v7  ;;  %152 = vmatpush.msra.mxu2 %v85_v7  ;;  %v163_v37 = vld [vmem:[%s290_s4] ss:$0 sm:$0xff]  ;;  %s195_s4 = smov 128  }
   0xc   :  { %108 = vmatpush.msra.mxu1 %v84_v8  ;;  %153 = vmatpush.msra.mxu2 %v84_v8 }
   0xe   :  { %109 = vmatpush.msra.mxu1 %v83_v9  ;;  %154 = vmatpush.msra.mxu2 %v83_v9 }
  0x10   :  { %110 = vmatpush.msra.mxu1 %v82_v10  ;;  %155 = vmatpush.msra.mxu2 %v82_v10 }
  0x12   :  { %111 = vmatpush.msra.mxu1 %v81_v11  ;;  %156 = vmatpush.msra.mxu2 %v81_v11 }
  0x14   :  { %112 = vmatpush.msra.mxu1 %v80_v12  ;;  %157 = vmatpush.msra.mxu2 %v80_v12 }
  0x16   :  { %113 = vmatpush.msra.mxu1 %v79_v13  ;;  %158 = vmatpush.msra.mxu2 %v79_v13 }
  0x86   :  { %v55_v15 = vpop.f32.mrf.mxu0 }
  0x87   :  { %v56_v16 = vadd.f32 %v162_v14, %v55_v15 }
  0x89   :  { %v61_v17 = vmul.f32 %v56_v16, %v56_v16 }
  0x8b   :  { %v63_v18 = vmul.f32 %v61_v17, %v56_v16 }
  0x8c   :  { %v58_v19 = vpop.f32.mrf.mxu3 }
  0x8d   :  { %v65_v20 = vmul.f32 0.044715, %v63_v18  ;;  %v59_v21 = vadd.f32 %v162_v14, %v58_v19 }
  0x8f   :  { %v67_v22 = vadd.f32 %v65_v20, %v56_v16  ;;  %v62_v23 = vmul.f32 %v59_v21, %v59_v21 }
  0x91   :  { %v64_v24 = vmul.f32 %v62_v23, %v59_v21  ;;  %v69_v25 = vmul.f32 0.7978846, %v67_v22 }
  0x93   :  { %v66_v26 = vmul.f32 0.044715, %v64_v24  ;;  %164 = vtanh.f32 %v69_v25 }
  0x95   :  { %v68_v27 = vadd.f32 %v66_v26, %v59_v21 }
  0x97   :  { %v70_v28 = vmul.f32 0.7978846, %v68_v27 }
  0x99   :  { %v165_v29 = vpop.eup %164  ;;  %166 = vtanh.f32 %v70_v28 }
  0x9a   :  { %v73_v30 = vadd.f32 1.0, %v165_v29 }
  0x9c   :  { %v75_v31 = vmul.f32 0.5, %v73_v30 }
  0x9e   :  { %v77_v32 = vmul.f32 %v75_v31, %v56_v16 }
  0x9f   :  { %v167_v33 = vpop.eup %166 }
  0xa0   :  { %145 = vmatmul.msk.f32.vlgmr.msra.gmra.mxu1 %vm91_vm1, %v77_v32  ;;  %v74_v34 = vadd.f32 1.0, %v167_v33 }
  0xa2   :  { %v76_v35 = vmul.f32 0.5, %v74_v34 }
  0xa4   :  { %v78_v36 = vmul.f32 %v76_v35, %v59_v21 }
  0xa6   :  { %146 = vmatmul.msk.f32.vlgmr.msra.gmra.mxu2 %vm91_vm1, %v78_v36 }
 0x11d   :  { %v115_v38 = vpop.f32.mrf.mxu1 }
 0x11e   :  { %v116_v39 = vadd.f32 %v163_v37, %v115_v38 }
 0x120   :  { %v121_v40 = vadd.f32 %v116_v39, %v21_v4 }
 0x122   :  { %123 = vst.msk [vmem:[#allocation2] sm:$0xff] %vm31_vm0, %v121_v40 }
 0x129   :  { %v118_v41 = vpop.f32.mrf.mxu2 }
 0x12a   :  { %v119_v42 = vadd.f32 %v163_v37, %v118_v41 }
 0x12c   :  { %v122_v43 = vadd.f32 %v119_v42, %v245_v5 }
 0x12e   :  { %124 = vst.msk [vmem:[#allocation2 + $0x8] sm:$0xff] %vm31_vm0, %v122_v43 }
 0x12f   :  { %137 = dma.vmem_to_hbm [thread:$0]  %s130_s22, 256, %s132_s25, [#allocation3], %s195_s4, %s195_s4, %s196_s26  }
 0x130   :  { %192 = dma.done.wait [#allocation3], 256  }
 0x131   :  { %193 = vsyncadd [#allocation3], 4294967040 }
 0x132   :  { %142 = vsyncpa [#allocation3], 1 }

</bundles_post_ra>
